<compile_context>
chip_gen: v7x
topology: tpu7x:2x2x1
jax: 0.10.0
libtpu: 0.0.40
codegen_flags: <defaults>
</compile_context>

<pallas_src>
import jax
import jax.numpy as jnp
import numpy as np
from jax.experimental import pallas as pl
from jax.experimental.pallas import tpu as pltpu

WINDOW_SIZE = 31   # module default
SIGMA = 4.0        # nn.Parameter(torch.Tensor([4])) initial value
N_WEIGHT = 5.0     # self.n


def _gauss_1d(window_size, sigma):
    r = window_size // 2
    i = jnp.arange(window_size, dtype=jnp.float32)
    up = -((i - r) ** 2)
    g = jnp.exp(up / (2.0 * sigma ** 2))
    return g / jnp.sum(g)


def _band_matrix(g, n, window_size):
    # M[a, b] = g[b - a + r] inside the band, else 0.
    # (M @ img) == 1D "same" cross-correlation of img columns with g (zero pad r).
    r = window_size // 2
    idx = jnp.arange(n)
    d = idx[None, :] - idx[:, None] + r
    valid = (d >= 0) & (d < window_size)
    return jnp.where(valid, g[jnp.clip(d, 0, window_size - 1)], 0.0).astype(jnp.float32)


def _triloss_kernel(pred_ref, mask_ref, kh_ref, kw_ref, out_ref):
    x = pred_ref[...].astype(jnp.float32)   # (H, W) logits
    m = mask_ref[...].astype(jnp.float32)   # (H, W) mask

    # Separable Gaussian blur == conv2d(mask, g g^T, stride=1, padding=w//2).
    # bf16 operands, f32 accumulation (native MXU rate on all generations).
    t = jnp.dot(kh_ref[...], m.astype(jnp.bfloat16),
                preferred_element_type=jnp.float32)              # (H, W) f32
    blur = jnp.dot(t.astype(jnp.bfloat16), kw_ref[...],
                   preferred_element_type=jnp.float32)           # (H, W) f32
    weight = 1.0 + N_WEIGHT * jnp.abs(blur - m)

    # One exp for both BCE and sigmoid: e = exp(-|x|).
    e = jnp.exp(-jnp.abs(x))
    bce = jnp.maximum(x, 0.0) - x * m + jnp.log1p(e)             # stable BCE-with-logits
    r = pl.reciprocal(1.0 + e, approx=True)                      # EUP vrcp
    p = jnp.where(x >= 0.0, r, e * r)                            # sigmoid(x)

    # Base sums; everything else (incl. reverse-IoU) is scalar algebra.
    mw = m * weight
    s_w = jnp.sum(weight, keepdims=True)            # (1, 1)
    s_bw = jnp.sum(weight * bce, keepdims=True)
    s_pw = jnp.sum(p * weight, keepdims=True)
    s_mw = jnp.sum(mw, keepdims=True)
    s_pmw = jnp.sum(p * mw, keepdims=True)

    wbce = s_bw / s_w

    inter = s_pmw
    union = s_pw + s_mw
    iou = 1.0 - (inter + 1.0) / (union - inter + 1.0)

    # rinter = sum((1-p)(1-m)w), runion = sum((2-p-m)w)
    rinter = s_w - s_pw - s_mw + s_pmw
    runion = 2.0 * s_w - s_pw - s_mw
    rev = 1.0 - (rinter + 1.0) / (runion - rinter + 1.0)

    # Single (1, 3) writeback: [wbce, iou, rev_iou].
    lane = jax.lax.broadcasted_iota(jnp.int32, (1, 3), 1)
    out_ref[...] = jnp.where(lane == 0, wbce, jnp.where(lane == 1, iou, rev))


def tri_loss(pred, mask, window_size=WINDOW_SIZE, sigma=SIGMA):
    B, C, H, W = pred.shape
    assert C == 1, "TriLoss conv kernel is (1,1,w,w) -> single channel"
    g = _gauss_1d(window_size, sigma)
    kh = _band_matrix(g, H, window_size).astype(jnp.bfloat16)   # (H, H)
    kw = _band_matrix(g, W, window_size).astype(jnp.bfloat16)   # (W, W), g symmetric

    # Squeezed leading (batch, channel) dims: kernel refs are (H, W).
    img_spec = pl.BlockSpec((None, None, H, W), lambda b: (b, 0, 0, 0))

    # Explicit VMEM budget: pred+mask double-buffered f32 tiles, bf16 Kh/Kw
    # (double-buffered), ~8 live (H, W) f32 temporaries, 2x headroom.
    # Cap at 48 MiB so the request is valid on v7x (64 MiB physical) too.
    img_bytes = 4 * H * W
    est = (2 * 2) * img_bytes + 8 * img_bytes + (2 * 2) * (H * H + W * W)
    vmem_limit = int(min(max(2 * est, 16 << 20), 48 << 20))

    out = pl.pallas_call(
        _triloss_kernel,
        out_shape=jax.ShapeDtypeStruct((B, 1, 3), jnp.float32),
        grid=(B,),
        in_specs=[
            img_spec,
            img_spec,
            pl.BlockSpec((H, H), lambda b: (0, 0)),
            pl.BlockSpec((W, W), lambda b: (0, 0)),
        ],
        out_specs=pl.BlockSpec((None, 1, 3), lambda b: (b, 0, 0)),
        compiler_params=pltpu.CompilerParams(
            dimension_semantics=("parallel",),
            vmem_limit_bytes=vmem_limit),
    )(pred, mask, kh, kw)

    # PyTorch returns per-(batch, channel) losses of shape (B, C).
    wbce = out[:, :, 0]
    iou = out[:, :, 1]
    rev = out[:, :, 2]
    return wbce, iou, rev


def tri_loss_ref(pred, mask, window_size=WINDOW_SIZE, sigma=SIGMA):
    # Pure-JAX f32 reference (XLA conv), for correctness checking only.
    g = _gauss_1d(window_size, sigma)
    k2d = (g[:, None] * g[None, :]).reshape(1, 1, window_size, window_size)
    r = window_size // 2
    blur = jax.lax.conv_general_dilated(
        mask, k2d, window_strides=(1, 1), padding=[(r, r), (r, r)],
        dimension_numbers=("NCHW", "OIHW", "NCHW"),
        precision=jax.lax.Precision.HIGHEST)
    weight = 1.0 + N_WEIGHT * jnp.abs(blur - mask)
    bce = jnp.maximum(pred, 0.0) - pred * mask + jnp.log1p(jnp.exp(-jnp.abs(pred)))
    wbce = (weight * bce).sum((2, 3)) / weight.sum((2, 3))
    p = jax.nn.sigmoid(pred)

    def _iou(pp, mm):
        inter = (pp * mm * weight).sum((2, 3))
        union = ((pp + mm) * weight).sum((2, 3))
        return 1.0 - (inter + 1.0) / (union - inter + 1.0)

    return wbce, _iou(p, mask), _iou(1.0 - p, 1.0 - mask)


if __name__ == "__main__":
    key = jax.random.PRNGKey(0)
    kp, km = jax.random.split(key)
    B, C, H, W = 2, 1, 16, 16
    pred = jax.random.normal(kp, (B, C, H, W), dtype=jnp.float32)        # logits
    mask = (jax.random.uniform(km, (B, C, H, W)) > 0.5).astype(jnp.float32)

    out = tri_loss(pred, mask)
    out = jax.block_until_ready(out)

    # Tolerance budget: bf16 blur operands (~0.3% on the 1+5|blur-m| weight)
    # plus approximate-reciprocal sigmoid; kernel accumulation stays f32.
    ref = tri_loss_ref(pred, mask)
    for o, rf in zip(out, ref):
        np.testing.assert_allclose(np.asarray(o), np.asarray(rf), rtol=1e-2, atol=1e-3)

    print("KERNEL_OK")
</pallas_src>

<mosaic_0001>
module attributes {stable_mosaic.version = 11 : i64} {
  func.func @_triloss_kernel(%arg0: i32, %arg1: memref<1x1x16x16xf32, #tpu.memory_space<vmem>>, %arg2: memref<1x1x16x16xf32, #tpu.memory_space<vmem>>, %arg3: memref<16x16xbf16, #tpu.memory_space<vmem>>, %arg4: memref<16x16xbf16, #tpu.memory_space<vmem>>, %arg5: memref<1x1x3xf32, #tpu.memory_space<vmem>>) attributes {dimension_semantics = [#tpu.dimension_semantics<parallel>], iteration_bounds = array<i64: 2>, scalar_prefetch = 0 : i64, scratch_operands = 0 : i64, tpu.core_type = #tpu.core_type<tc>, window_params = [{transform_indices = @transform_0, window_bounds = array<i64: 1, 1, 16, 16>}, {transform_indices = @transform_1, window_bounds = array<i64: 1, 1, 16, 16>}, {pipeline_mode = #tpu.pipeline_mode<synchronous>, transform_indices = @transform_2, window_bounds = array<i64: 16, 16>}, {pipeline_mode = #tpu.pipeline_mode<synchronous>, transform_indices = @transform_3, window_bounds = array<i64: 16, 16>}, {transform_indices = @transform_4, window_bounds = array<i64: 1, 1, 3>}]} {
    %c0 = arith.constant 0 : index
    %c0_0 = arith.constant 0 : index
    %c0_1 = arith.constant 0 : index
    %c0_2 = arith.constant 0 : index
    %0 = vector.load %arg1[%c0, %c0_0, %c0_1, %c0_2] : memref<1x1x16x16xf32, #tpu.memory_space<vmem>>, vector<1x1x16x16xf32>
    %1 = vector.shape_cast %0 : vector<1x1x16x16xf32> to vector<16x16xf32>
    %c0_3 = arith.constant 0 : index
    %c0_4 = arith.constant 0 : index
    %c0_5 = arith.constant 0 : index
    %c0_6 = arith.constant 0 : index
    %2 = vector.load %arg2[%c0_3, %c0_4, %c0_5, %c0_6] : memref<1x1x16x16xf32, #tpu.memory_space<vmem>>, vector<1x1x16x16xf32>
    %3 = vector.shape_cast %2 : vector<1x1x16x16xf32> to vector<16x16xf32>
    %c0_7 = arith.constant 0 : index
    %c0_8 = arith.constant 0 : index
    %4 = vector.load %arg3[%c0_7, %c0_8] : memref<16x16xbf16, #tpu.memory_space<vmem>>, vector<16x16xbf16>
    %5 = arith.truncf %3 : vector<16x16xf32> to vector<16x16xbf16>
    %cst = arith.constant dense<0.000000e+00> : vector<16x16xf32>
    %6 = tpu.matmul %4, %5, %cst {dimension_numbers = #tpu.dot_dimension_numbers<[1], [0], [0], [1], [0, 0, 1, 1], [], []>} : vector<16x16xbf16>, vector<16x16xbf16>, vector<16x16xf32> -> vector<16x16xf32>
    %7 = arith.truncf %6 : vector<16x16xf32> to vector<16x16xbf16>
    %c0_9 = arith.constant 0 : index
    %c0_10 = arith.constant 0 : index
    %8 = vector.load %arg4[%c0_9, %c0_10] : memref<16x16xbf16, #tpu.memory_space<vmem>>, vector<16x16xbf16>
    %cst_11 = arith.constant dense<0.000000e+00> : vector<16x16xf32>
    %9 = tpu.matmul %7, %8, %cst_11 {dimension_numbers = #tpu.dot_dimension_numbers<[1], [0], [0], [1], [0, 0, 1, 1], [], []>} : vector<16x16xbf16>, vector<16x16xbf16>, vector<16x16xf32> -> vector<16x16xf32>
    %10 = arith.subf %9, %3 : vector<16x16xf32>
    %11 = math.absf %10 : vector<16x16xf32>
    %cst_12 = arith.constant 5.000000e+00 : f32
    %12 = vector.broadcast %cst_12 : f32 to vector<16x16xf32>
    %13 = arith.mulf %12, %11 : vector<16x16xf32>
    %cst_13 = arith.constant 1.000000e+00 : f32
    %14 = vector.broadcast %cst_13 : f32 to vector<16x16xf32>
    %15 = arith.addf %14, %13 : vector<16x16xf32>
    %16 = math.absf %1 : vector<16x16xf32>
    %cst_14 = arith.constant 0.000000e+00 : f32
    %17 = vector.broadcast %cst_14 : f32 to vector<16x16xf32>
    %18 = arith.subf %17, %16 : vector<16x16xf32>
    %19 = math.exp %18 : vector<16x16xf32>
    %cst_15 = arith.constant 0.000000e+00 : f32
    %20 = vector.broadcast %cst_15 : f32 to vector<16x16xf32>
    %21 = arith.maximumf %1, %20 : vector<16x16xf32>
    %22 = arith.mulf %1, %3 : vector<16x16xf32>
    %23 = arith.subf %21, %22 : vector<16x16xf32>
    %24 = math.log1p %19 : vector<16x16xf32>
    %25 = arith.addf %23, %24 : vector<16x16xf32>
    %cst_16 = arith.constant 1.000000e+00 : f32
    %26 = vector.broadcast %cst_16 : f32 to vector<16x16xf32>
    %27 = arith.addf %26, %19 : vector<16x16xf32>
    %28 = tpu.reciprocal %27 {approx = true} : vector<16x16xf32> -> vector<16x16xf32>
    %cst_17 = arith.constant 0.000000e+00 : f32
    %29 = vector.broadcast %cst_17 : f32 to vector<16x16xf32>
    %30 = arith.cmpf oge, %1, %29 : vector<16x16xf32>
    %31 = arith.mulf %19, %28 : vector<16x16xf32>
    %32 = arith.select %30, %28, %31 : vector<16x16xi1>, vector<16x16xf32>
    %33 = arith.mulf %3, %15 : vector<16x16xf32>
    %34 = vector.shape_cast %15 : vector<16x16xf32> to vector<1x16x16xf32>
    %cst_18 = arith.constant dense<0.000000e+00> : vector<1xf32>
    %35 = vector.multi_reduction <add>, %34, %cst_18 [1, 2] : vector<1x16x16xf32> to vector<1xf32>
    %36 = vector.shape_cast %35 : vector<1xf32> to vector<1x1x1xf32>
    %37 = vector.extract %36[0, 0, 0] : f32 from vector<1x1x1xf32>
    %38 = vector.broadcast %37 : f32 to vector<1x1xf32>
    %39 = arith.mulf %15, %25 : vector<16x16xf32>
    %40 = vector.shape_cast %39 : vector<16x16xf32> to vector<1x16x16xf32>
    %cst_19 = arith.constant dense<0.000000e+00> : vector<1xf32>
    %41 = vector.multi_reduction <add>, %40, %cst_19 [1, 2] : vector<1x16x16xf32> to vector<1xf32>
    %42 = vector.shape_cast %41 : vector<1xf32> to vector<1x1x1xf32>
    %43 = vector.extract %42[0, 0, 0] : f32 from vector<1x1x1xf32>
    %44 = vector.broadcast %43 : f32 to vector<1x1xf32>
    %45 = arith.mulf %32, %15 : vector<16x16xf32>
    %46 = vector.shape_cast %45 : vector<16x16xf32> to vector<1x16x16xf32>
    %cst_20 = arith.constant dense<0.000000e+00> : vector<1xf32>
    %47 = vector.multi_reduction <add>, %46, %cst_20 [1, 2] : vector<1x16x16xf32> to vector<1xf32>
    %48 = vector.shape_cast %47 : vector<1xf32> to vector<1x1x1xf32>
    %49 = vector.extract %48[0, 0, 0] : f32 from vector<1x1x1xf32>
    %50 = vector.broadcast %49 : f32 to vector<1x1xf32>
    %51 = vector.shape_cast %33 : vector<16x16xf32> to vector<1x16x16xf32>
    %cst_21 = arith.constant dense<0.000000e+00> : vector<1xf32>
    %52 = vector.multi_reduction <add>, %51, %cst_21 [1, 2] : vector<1x16x16xf32> to vector<1xf32>
    %53 = vector.shape_cast %52 : vector<1xf32> to vector<1x1x1xf32>
    %54 = vector.extract %53[0, 0, 0] : f32 from vector<1x1x1xf32>
    %55 = vector.broadcast %54 : f32 to vector<1x1xf32>
    %56 = arith.mulf %32, %33 : vector<16x16xf32>
    %57 = vector.shape_cast %56 : vector<16x16xf32> to vector<1x16x16xf32>
    %cst_22 = arith.constant dense<0.000000e+00> : vector<1xf32>
    %58 = vector.multi_reduction <add>, %57, %cst_22 [1, 2] : vector<1x16x16xf32> to vector<1xf32>
    %59 = vector.shape_cast %58 : vector<1xf32> to vector<1x1x1xf32>
    %60 = vector.extract %59[0, 0, 0] : f32 from vector<1x1x1xf32>
    %61 = vector.broadcast %60 : f32 to vector<1x1xf32>
    %62 = arith.divf %44, %38 : vector<1x1xf32>
    %63 = arith.addf %50, %55 : vector<1x1xf32>
    %cst_23 = arith.constant 1.000000e+00 : f32
    %64 = vector.broadcast %cst_23 : f32 to vector<1x1xf32>
    %65 = arith.addf %61, %64 : vector<1x1xf32>
    %66 = arith.subf %63, %61 : vector<1x1xf32>
    %cst_24 = arith.constant 1.000000e+00 : f32
    %67 = vector.broadcast %cst_24 : f32 to vector<1x1xf32>
    %68 = arith.addf %66, %67 : vector<1x1xf32>
    %69 = arith.divf %65, %68 : vector<1x1xf32>
    %cst_25 = arith.constant 1.000000e+00 : f32
    %70 = vector.broadcast %cst_25 : f32 to vector<1x1xf32>
    %71 = arith.subf %70, %69 : vector<1x1xf32>
    %72 = arith.subf %38, %50 : vector<1x1xf32>
    %73 = arith.subf %72, %55 : vector<1x1xf32>
    %74 = arith.addf %73, %61 : vector<1x1xf32>
    %cst_26 = arith.constant 2.000000e+00 : f32
    %75 = vector.broadcast %cst_26 : f32 to vector<1x1xf32>
    %76 = arith.mulf %75, %38 : vector<1x1xf32>
    %77 = arith.subf %76, %50 : vector<1x1xf32>
    %78 = arith.subf %77, %55 : vector<1x1xf32>
    %cst_27 = arith.constant 1.000000e+00 : f32
    %79 = vector.broadcast %cst_27 : f32 to vector<1x1xf32>
    %80 = arith.addf %74, %79 : vector<1x1xf32>
    %81 = arith.subf %78, %74 : vector<1x1xf32>
    %cst_28 = arith.constant 1.000000e+00 : f32
    %82 = vector.broadcast %cst_28 : f32 to vector<1x1xf32>
    %83 = arith.addf %81, %82 : vector<1x1xf32>
    %84 = arith.divf %80, %83 : vector<1x1xf32>
    %cst_29 = arith.constant 1.000000e+00 : f32
    %85 = vector.broadcast %cst_29 : f32 to vector<1x1xf32>
    %86 = arith.subf %85, %84 : vector<1x1xf32>
    %87 = tpu.iota {dimensions = array<i32: 1>} : vector<1x3xi32>
    %c0_i32 = arith.constant 0 : i32
    %88 = vector.broadcast %c0_i32 : i32 to vector<1x3xi32>
    %89 = arith.cmpi eq, %87, %88 : vector<1x3xi32>
    %c1_i32 = arith.constant 1 : i32
    %90 = vector.broadcast %c1_i32 : i32 to vector<1x3xi32>
    %91 = arith.cmpi eq, %87, %90 : vector<1x3xi32>
    %92 = vector.shape_cast %71 : vector<1x1xf32> to vector<1x1xf32>
    %93 = vector.broadcast %92 : vector<1x1xf32> to vector<1x3xf32>
    %94 = vector.shape_cast %86 : vector<1x1xf32> to vector<1x1xf32>
    %95 = vector.broadcast %94 : vector<1x1xf32> to vector<1x3xf32>
    %96 = arith.select %91, %93, %95 : vector<1x3xi1>, vector<1x3xf32>
    %97 = vector.shape_cast %62 : vector<1x1xf32> to vector<1x1xf32>
    %98 = vector.broadcast %97 : vector<1x1xf32> to vector<1x3xf32>
    %99 = arith.select %89, %98, %96 : vector<1x3xi1>, vector<1x3xf32>
    %c0_30 = arith.constant 0 : index
    %c0_31 = arith.constant 0 : index
    %c0_32 = arith.constant 0 : index
    %100 = vector.load %arg5[%c0_30, %c0_31, %c0_32] : memref<1x1x3xf32, #tpu.memory_space<vmem>>, vector<1x1x3xf32>
    %101 = vector.shape_cast %100 : vector<1x1x3xf32> to vector<1x3xf32>
    %102 = vector.shape_cast %99 : vector<1x3xf32> to vector<1x1x3xf32>
    tpu.vector_store %arg5[%c0_30, %c0_31, %c0_32], %102 {strides = array<i32>} : memref<1x1x3xf32, #tpu.memory_space<vmem>>, vector<1x1x3xf32>,
    return
  }
  func.func @transform_0(%arg0: i32) -> (i32, i32, i32, i32) {
    %c0_i32 = arith.constant 0 : i32
    %c0_i32_0 = arith.constant 0 : i32
    %c0_i32_1 = arith.constant 0 : i32
    %c0_i32_2 = arith.constant 0 : i32
    return %arg0, %c0_i32, %c0_i32_0, %c0_i32_1 : i32, i32, i32, i32
  }
  func.func @transform_1(%arg0: i32) -> (i32, i32, i32, i32) {
    %c0_i32 = arith.constant 0 : i32
    %c0_i32_0 = arith.constant 0 : i32
    %c0_i32_1 = arith.constant 0 : i32
    %c0_i32_2 = arith.constant 0 : i32
    return %arg0, %c0_i32, %c0_i32_0, %c0_i32_1 : i32, i32, i32, i32
  }
  func.func @transform_2(%arg0: i32) -> (i32, i32) {
    %c0_i32 = arith.constant 0 : i32
    %c0_i32_0 = arith.constant 0 : i32
    %c0_i32_1 = arith.constant 0 : i32
    return %c0_i32, %c0_i32_0 : i32, i32
  }
  func.func @transform_3(%arg0: i32) -> (i32, i32) {
    %c0_i32 = arith.constant 0 : i32
    %c0_i32_0 = arith.constant 0 : i32
    %c0_i32_1 = arith.constant 0 : i32
    return %c0_i32, %c0_i32_0 : i32, i32
  }
  func.func @transform_4(%arg0: i32) -> (i32, i32, i32) {
    %c0_i32 = arith.constant 0 : i32
    %c0_i32_0 = arith.constant 0 : i32
    %c0_i32_1 = arith.constant 0 : i32
    return %arg0, %c0_i32, %c0_i32_0 : i32, i32, i32
  }
}

</mosaic_0001>

<bundles_post_ra>
// kernel: tpu_custom_call.1
= control target key start
LH: loop header
LB: loop body
LE: loop exit
PB: predicated region body
PF: predicated region fallthrough
CT: control target
= control target key end

     0   :  { %s1280_s0 = inlined_call_operand.hbm [shape: f32[2,1,16,16], index: 0, kind: input, shape index: {}]   ;;  %s1281_s1 = inlined_call_operand.hbm [shape: f32[2,1,16,16], index: 1, kind: input, shape index: {}]   ;;  %s1282_s2 = inlined_call_operand.hbm [shape: bf16[16,16], index: 2, kind: input, shape index: {}]   ;;  %s1283_s3 = inlined_call_operand.vmem [shape: bf16[16,16], index: 3, kind: input, shape index: {}]   ;;  %s1284_s4 = inlined_call_operand.hbm [shape: f32[2,1,3], index: 4, kind: output, shape index: {}]  }
   0x1   :  { %1288 = sst [smem:[#allocation13_spill]] %s1280_s0 }
   0x2   :  { %9 = vsyncpa [#allocation3], 0 }
   0x3   :  { %11 = vsyncpa [#allocation3 + $0x1], 0 }
   0x4   :  { %12 = vsyncpa [#allocation6], 0 }
   0x5   :  { %14 = vsyncpa [#allocation6 + $0x1], 0 }
   0x6   :  { %15 = vsyncpa [#allocation4], 0 }
   0x7   :  { %17 = vsyncpa [#allocation4 + $0x1], 0  ;;  %s981_s15 = smov 0   ;;  %s983_s16 = smov 0  }
   0x8   :  { %s985_s17 = smov 0   ;;  %s987_s18 = smov 0  }
   0x9 LB: > { %s1002_s19 = sadd.s32 4294967295, %s944_s18   ;;  %s645_s20 = sadd.s32 4294967294, %s944_s18   ;;  %s944_s18 = sphi %s987_s18, %s1310_s18   ;;  %s940_s17 = sphi %s985_s17, %s1309_s17   ;;  %s936_s16 = sphi %s983_s16, %s1308_s16   ;;  %s932_s15 = sphi %s981_s15, %s1307_s15  }
   0xa   : > { %p43_p0 = scmp.ne.s32.totalorder %s936_s16, %s932_s15  ;;  %p1285_p1 = scmp.eq.s32.totalorder %s1002_s19, 0 }
   0xb   : > { %p141_p3 = scmp.eq.s32.totalorder %s645_s20, 1  ;;  %p646_p5 = scmp.ge.s32.totalorder %s944_s18, 1 }
   0xc   : > { %p1011_p4 = por %p1285_p1, %p43_p0  ;;  %p148_p7 = scmp.lt.s32.totalorder %s944_s18, 3 }
   0xd   : > { %p1016_p6 = por %p141_p3, %p43_p0  ;;  %s946_s24 = smov [#allocation7]  }
   0xe   : > { %s1289_s21 = scalar_select %p1011_p4, 1, 0 }
   0xf   : > { %s1290_s22 = scalar_select %p1016_p6, 1, 0 }
  0x10   : > { %p1021_p8 = pnand %p646_p5, %p148_p7  ;;  %s160_s25 = sshll.u32 %s946_s24, 4  ;;  %s1025_s25 = int_to_ptr.vmem [resolvable:$true] %s160_s25 }
  0x11   : > { %s1037_s27 = sadd.s32 1, %s944_s18   ;;  %s30_s28 = sadd.s32 1, %s940_s17 }
  0x12   : > { %s1291_s23 = scalar_select %p1021_p8, 1, 0 }
  0x13   : > { %p704_p9 = pneg %p1021_p8  ;;  %s27_s29 = ssub.s32 %s944_s18, %s1037_s27 }
  0x14   : > { %s782_s6 = scalar_lea.hbm %s1282_s2, 128 }
  0x15   : > { %p1032_p11 = pnand %p704_p9, %p1285_p1  ;;  %p783_p12 = scmp.ne.s32.totalorder %s1282_s2, %s782_s6 }
  0x16   : > { %p789_p5 = scmp.lt.u32.totalorder %s782_s6, %s1282_s2 }
  0x17   : > { %p784_p13 = pneg %p1032_p11 }
  0x19   : > { %p785_p0 = pnand %p784_p13, %p783_p12 }
  0x1b   : > { %p786_p3 = pneg %p785_p0 }
  0x1d   : > { %p791_p7 = pnand %p789_p5, %p786_p3 }
  0x1f   : > { %794 = shalt.err (!%p791_p7)
}
  0x20   : > { %s795_s11 = scalar_lea.vmem %s1025_s25, 128  ;;  %p803_p2 = scmp.lt.s32.totalorder %s1025_s25, %s1025_s25 }
  0x21   : > { %p796_p9 = scmp.ne.s32.totalorder %s1025_s25, %s795_s11  ;;  %p804_p6 = scmp.lt.s32.totalorder %s795_s11, %s795_s11 }
  0x23   : > { %p798_p10 = pnand %p796_p9, %p784_p13  ;;  %p805_p4 = por %p804_p6, %p803_p2 }
  0x25   : > { %p799_p1 = pneg %p798_p10 }
  0x27   : > { %p806_p8 = pnand %p805_p4, %p799_p1 }
  0x29   : > { %809 = shalt.err (!%p806_p8)
}
  0x2a   : > { %s947_s12 = smov 64   ;;  %s948_s13 = smov 4  }
  0x2b   : > { %707 = dma.hbm_to_vmem [thread:$0]  (!%p1032_p11), %s1282_s2, 128, %s1025_s25, [#allocation6], %s947_s12, %s947_s12, %s948_s13  }
  0x2c   : > { %p28_p1 = scmp.eq.s32.totalorder %s27_s29, 0  ;;  %p37_p2 = scmp.ne.s32.totalorder %s940_s17, %s936_s16 }
  0x2d   : > { %p38_p4 = scmp.eq.s32.totalorder %s944_s18, 0  ;;  %p720_p6 = scmp.lt.s32.totalorder %s944_s18, 2 }
  0x2e   : > { %s1068_s24 = scalar_select %p28_p1, %s940_s17, %s30_s28  }
  0x2f   : > { %p39_p8 = por %p38_p4, %p37_p2  ;;  %p1293_p10 = scmp.eq.s32.totalorder %s1002_s19, 1 }
  0x30   : > { %s177_s5 = sand.u32 1, %s940_s17   ;;  %s666_s6 = sshll.u32 %s944_s18, 8 }
  0x31   : > { %p1072_p12 = por %p1293_p10, %p37_p2  ;;  %s1078_s7 = sshll.u32 %s177_s5, 4 }
  0x32   : > { %s1295_s0 = sld [smem:[#allocation13_spill]]  ;;  %s181_s28 = scalar_lea.vmem [#allocation2], %s1078_s7 }
  0x33   : > { %s188_s29 = sshll.u32 %s181_s28, 4  ;;  %p1088_p11 = pnand %p720_p6, %p39_p8  ;;  %s1092_s29 = int_to_ptr.vmem [resolvable:$true] %s188_s29 }
  0x34   : > { %s1094_s10 = scalar_lea.sflag [#allocation3], %s177_s5 }
  0x35   : > { %p812_p0 = pneg %p1088_p11 }
  0x38   : > { %s1085_s25 = scalar_lea.hbm %s1295_s0, %s666_s6  ;;  %s815_s14 = scalar_lea.hbm %s1295_s0, 512 }
  0x39   : > { %s810_s11 = scalar_lea.hbm %s1085_s25, 256  ;;  %p816_p7 = scmp.lt.u32.totalorder %s1085_s25, %s1295_s0 }
  0x3a   : > { %p811_p13 = scmp.ne.s32.totalorder %s1085_s25, %s810_s11  ;;  %p817_p9 = scmp.lt.u32.totalorder %s815_s14, %s810_s11 }
  0x3b   : > { %p819_p2 = scmp.lt.u32.totalorder %s810_s11, %s1085_s25 }
  0x3c   : > { %p813_p3 = pnand %p812_p0, %p811_p13  ;;  %p818_p1 = por %p817_p9, %p816_p7 }
  0x3e   : > { %p814_p5 = pneg %p813_p3  ;;  %p820_p4 = por %p819_p2, %p818_p1 }
  0x40   : > { %p821_p6 = pnand %p820_p4, %p814_p5 }
  0x42   : > { %824 = shalt.err (!%p821_p6)
}
  0x43   : > { %s825_s5 = scalar_lea.vmem %s1092_s29, 256  ;;  %s949_s8 = smov [#allocation2]  }
  0x44   : > { %p826_p8 = scmp.ne.s32.totalorder %s1092_s29, %s825_s5  ;;  %s830_s28 = sshll.u32 %s949_s8, 4  ;;  %s831_s28 = int_to_ptr.vmem [resolvable:$false] %s830_s28 }
  0x45   : > { %s832_s12 = scalar_lea.vmem %s831_s28, 512  ;;  %p833_p3 = scmp.lt.s32.totalorder %s1092_s29, %s831_s28 }
  0x46   : > { %p828_p10 = pnand %p826_p8, %p812_p0  ;;  %p834_p7 = scmp.lt.s32.totalorder %s832_s12, %s825_s5 }
  0x48   : > { %p829_p13 = pneg %p828_p10  ;;  %p835_p9 = por %p834_p7, %p833_p3 }
  0x4a   : > { %p836_p1 = pnand %p835_p9, %p829_p13 }
  0x4c   : > { %839 = shalt.err (!%p836_p1)
}
  0x4d   : > { %s950_s11 = smov 128   ;;  %s951_s13 = smov 8  }
  0x4e   : > { %711 = dma.hbm_to_vmem [thread:$0]  (!%p1088_p11), %s1085_s25, 256, %s1092_s29, %s1094_s10, %s950_s11, %s950_s11, %s951_s13  }
  0x4f   : > { %s1130_s26 = scalar_lea.hbm %s1281_s1, %s666_s6  ;;  %s202_s5 = scalar_lea.vmem [#allocation5], %s1078_s7 }
  0x50   : > { %s209_s8 = sshll.u32 %s202_s5, 4  ;;  %s198_s28 = sand.u32 1, %s944_s18   ;;  %s1134_s8 = int_to_ptr.vmem [resolvable:$true] %s209_s8 }
  0x51   : > { %s1136_s12 = scalar_lea.sflag [#allocation6], %s198_s28  ;;  %s840_s0 = scalar_lea.hbm %s1130_s26, 256 }
  0x52   : > { %p841_p5 = scmp.ne.s32.totalorder %s1130_s26, %s840_s0  ;;  %s845_s29 = scalar_lea.hbm %s1281_s1, 512 }
  0x53   : > { %p846_p6 = scmp.lt.u32.totalorder %s1130_s26, %s1281_s1  ;;  %p847_p8 = scmp.lt.u32.totalorder %s845_s29, %s840_s0 }
  0x54   : > { %p843_p2 = pnand %p841_p5, %p812_p0  ;;  %p849_p13 = scmp.lt.u32.totalorder %s840_s0, %s1130_s26 }
  0x55   : > { %p848_p10 = por %p847_p8, %p846_p6 }
  0x56   : > { %p844_p4 = pneg %p843_p2 }
  0x57   : > { %p850_p3 = por %p849_p13, %p848_p10 }
  0x59   : > { %p851_p7 = pnand %p850_p3, %p844_p4 }
  0x5b   : > { %854 = shalt.err (!%p851_p7)
}
  0x5c   : > { %s855_s7 = scalar_lea.vmem %s1134_s8, 256  ;;  %s952_s20 = smov [#allocation5]  }
  0x5d   : > { %p856_p9 = scmp.ne.s32.totalorder %s1134_s8, %s855_s7  ;;  %s860_s5 = sshll.u32 %s952_s20, 4  ;;  %s861_s5 = int_to_ptr.vmem [resolvable:$false] %s860_s5 }
  0x5e   : > { %s862_s28 = scalar_lea.vmem %s861_s5, 512  ;;  %p863_p2 = scmp.lt.s32.totalorder %s1134_s8, %s861_s5 }
  0x5f   : > { %p858_p1 = pnand %p856_p9, %p812_p0  ;;  %p864_p6 = scmp.lt.s32.totalorder %s862_s28, %s855_s7 }
  0x61   : > { %p859_p5 = pneg %p858_p1  ;;  %p865_p8 = por %p864_p6, %p863_p2 }
  0x63   : > { %p866_p10 = pnand %p865_p8, %p859_p5 }
  0x65   : > { %869 = shalt.err (!%p866_p10)
}
  0x66   : > { %714 = dma.hbm_to_vmem [thread:$0]  (!%p1088_p11), %s1130_s26, 256, %s1134_s8, %s1136_s12, %s950_s11, %s950_s11, %s951_s13  }
  0x67   : > { %p1297_p0 = scmp.ne.s32.totalorder %s1291_s23, 0 }
  0x68   : > { %s1168_s0 = sand.u32 (!%p1297_p0), 1, %s936_s16   ;;  %p1298_p4 = scmp.ne.s32.totalorder (!%p1297_p0), %s1289_s21, 0 }
  0x69   : > { %221 = sbr.rel (%p1297_p0) target bundleno = 817 (0x331), region = 36  ;;  %s656_s25 = sshll.u32 (!%p1297_p0), %s1168_s0, 4 }
  0x6a   : > { %s224_s6 = scalar_lea.sflag (!%p1297_p0), [#allocation3], %s1168_s0  ;;  %s1172_s29 = scalar_lea.vmem (!%p1297_p0), [#allocation2], %s656_s25 }
  0x70   : > { %915 = dma.done.wait (%p1298_p4), %s224_s6, 256  }
  0x71   : > { %917 = vsyncadd (%p1298_p4), %s224_s6, 4294967040  ;;  %s232_s9 = sand.u32 1, %s1002_s19   ;;  %s236_s11 = scalar_lea.vmem [#allocation5], %s656_s25 }
  0x72   : > { %s233_s23 = scalar_lea.sflag [#allocation6], %s232_s9 }
  0x73   : > { %919 = dma.done.wait (%p1298_p4), %s233_s23, 256  }
  0x74   : > { %921 = vsyncadd (%p1298_p4), %s233_s23, 4294967040  ;;  %p1299_p11 = scmp.eq.s32.totalorder %s1002_s19, 0 }
  0x76   : > { %923 = dma.done.wait (%p1299_p11), [#allocation6], 128   ;;  %p1300_p13 = pmov %p1299_p11 }
  0x77   : > { %v953_v0 = vmov 0.0   ;;  %vm954_vm0 = vmmov 0   ;;  %v1187_v1 = vld [vmem:[%s236_s11] sm:$0xff]  ;;  %v1189_v2 = vld [vmem:[%s236_s11 + $0x8] sm:$0xff]  ;;  %vm282_vm1 = vcmask 130048   ;;  %s663_s7 = sshll.u32 %s1002_s19, 4 }
  0x78   : > { %925 = vsyncadd (%p1300_p13), [#allocation6], 4294967168  ;;  %672 = vmatprep.subr.bf16.mxu0 %v953_v0  ;;  %674 = vmatprep.mubr.msk.bf16.mxu0 %vm954_vm0, %v953_v0  ;;  %v276_v3 = vpack.c.bf16 %v1189_v2, %v1187_v1  ;;  %v762_v4 = vld [vmem:[#allocation7] sm:$0xff]   ;;  %v271_v12 = vld [vmem:[%s1172_s29 + $0x8] sm:$0xff]  ;;  %s268_s20 = scalar_lea.vmem [#allocation8], %s1168_s0  ;;  %vm532_vm8 = vcmask 16384   ;;  %s1236_s6 = scalar_lea.hbm %s1284_s4, %s663_s7 }
  0x79   : > { %678 = vmatprep.subr.bf16.mxu1 %v953_v0  ;;  %680 = vmatprep.mubr.msk.bf16.mxu1 %vm954_vm0, %v953_v0  ;;  %v763_v5 = vld [vmem:[%s1283_s3] sm:$0xff]   ;;  %v389_v14 = vand.u32 2147483647, %v271_v12  ;;  %v399_v36 = vmul.f32 %v1189_v2, %v271_v12  ;;  %v397_v37 = vmax.f32 %v271_v12, 0.0  ;;  %vm427_vm5 = vcmp.ge.f32.partialorder %v271_v12, 0.0  ;;  %s547_s5 = sshll.u32 %s268_s20, 4  ;;  %s1238_s5 = int_to_ptr.vmem [resolvable:$true] %s547_s5 }
  0x7a   : > { %673 = vmatpush3.bf16.msra.mxu0 %v276_v3  ;;  %679 = vmatpush3.bf16.msra.mxu1 %v763_v5  ;;  %v270_v11 = vld [vmem:[%s1172_s29] sm:$0xff]  ;;  %s535_s19 = scalar_lea.sflag [#allocation4], %s1168_s0  ;;  %s870_s29 = scalar_lea.vmem %s1238_s5, 16 }
  0x7b   : > { %v388_v13 = vand.u32 2147483647, %v270_v11  ;;  %v391_v16 = vsub.f32 0.0, %v389_v14  ;;  %v398_v30 = vmul.f32 %v1187_v1, %v270_v11  ;;  %v396_v31 = vmax.f32 %v270_v11, 0.0  ;;  %p871_p3 = scmp.ne.s32.totalorder %s1238_s5, %s870_s29  ;;  %s955_s9 = smov [#allocation8]  }
  0x7c   : > { %vm426_vm4 = vcmp.ge.f32.partialorder %v270_v11, 0.0  ;;  %v401_v53 = vsub.f32 %v397_v37, %v399_v36  ;;  %s874_s23 = sshll.u32 %s955_s9, 4  ;;  %s875_s23 = int_to_ptr.vmem [resolvable:$false] %s874_s23 }
  0x7d   : > { %675 = vmatmul.mubr.msk.bf16.vlgmr.msra.gmra.mrb[0].mxu0 %vm282_vm1, %v762_v4  ;;  %v390_v15 = vsub.f32 0.0, %v388_v13  ;;  %v394_v18 = vmul.f32 1.442695, %v391_v16  ;;  %v400_v45 = vsub.f32 %v396_v31, %v398_v30  ;;  %p872_p7 = pnand %p871_p3, %p1072_p12  ;;  %s876_s11 = scalar_lea.vmem %s875_s23, 32 }
  0x7e   : > { %p877_p1 = scmp.lt.s32.totalorder %s1238_s5, %s875_s23  ;;  %p878_p5 = scmp.lt.s32.totalorder %s876_s11, %s870_s29 }
  0x7f   : > { %v392_v17 = vmul.f32 1.442695, %v390_v15  ;;  %p873_p9 = pneg %p872_p7 }
  0x80   : > { %p879_p2 = por %p878_p5, %p877_p1 }
  0x81   : > { %764 = vpow2.f32 %v392_v17 }
  0x82   : > { %766 = vpow2.f32 %v394_v18  ;;  %p880_p6 = pnand %p879_p2, %p873_p9 }
  0x8b   : > { %v765_v19 = vpop.eup %764 }
  0x8c   : > { %v767_v20 = vpop.eup %766  ;;  %v402_v21 = vadd.f32 1.0, %v765_v19  ;;  %v405_v23 = vmul.f32 -0.5, %v765_v19  ;;  %v408_v27 = vand.u32 2147483647, %v765_v19 }
  0x8d   : > { %v411_v22 = vadd.f32 1.0, %v767_v20  ;;  %v414_v24 = vmul.f32 -0.5, %v767_v20  ;;  %v417_v32 = vand.u32 2147483647, %v767_v20 }
  0x8e   : > { %768 = vlog2.f32 %v402_v21  ;;  %v406_v25 = vadd.f32 1.0, %v405_v23  ;;  %vm1202_vm2 = vcmp.lt.f32.partialorder %v408_v27, 0.0004427343 }
  0x8f   : > { %770 = vlog2.f32 %v411_v22  ;;  %v415_v28 = vadd.f32 1.0, %v414_v24  ;;  %vm1207_vm3 = vcmp.lt.f32.partialorder %v417_v32, 0.0004427343 }
  0x90   : > { %772 = vrcp.f32 %v402_v21  ;;  %v407_v34 = vmul.f32 %v765_v19, %v406_v25 }
  0x91   : > { %774 = vrcp.f32 %v411_v22  ;;  %v416_v41 = vmul.f32 %v767_v20, %v415_v28 }
  0x98   : > { %v769_v26 = vpop.eup %768 }
  0x99   : > { %v771_v29 = vpop.eup %770  ;;  %v404_v33 = vmul.f32 0.6931472, %v769_v26 }
  0x9a   : > { %v773_v35 = vpop.eup %772  ;;  %v413_v40 = vmul.f32 0.6931472, %v771_v29 }
  0x9b   : > { %v775_v42 = vpop.eup %774  ;;  %v428_v48 = vmul.f32 %v773_v35, %v765_v19  ;;  %v410_v49 = vsel %vm1202_vm2, %v407_v34, %v404_v33 }
  0x9c   : > { %v429_v54 = vmul.f32 %v775_v42, %v767_v20  ;;  %v419_v55 = vsel %vm1207_vm3, %v416_v41, %v413_v40  ;;  %v420_v58 = vadd.f32 %v410_v49, %v400_v45 }
  0x9d   : > { %v430_v59 = vsel %vm426_vm4, %v773_v35, %v428_v48  ;;  %v421_v62 = vadd.f32 %v419_v55, %v401_v53 }
  0x9e   : > { %v431_v63 = vsel %vm427_vm5, %v775_v42, %v429_v54 }
 0x150   : > { %v320_v6 = vpop.f32.mrb[0].mxu0 }
 0x151   : > { %v676_v7 = vpop.f32.mrb[1].mxu0 }
 0x152   : > { %v323_v8 = vpop.f32.mrb[2].mxu0 }
 0x153   : > { %v327_v9 = vpack.c.bf16 %v323_v8, %v320_v6  ;;  %v677_v10 = vpop.f32.mrb[3].mxu0 }
 0x155   : > { %681 = vmatmul.mubr.msk.bf16.vlgmr.msra.gmra.mrb[0].mxu1 %vm282_vm1, %v327_v9 }
 0x228   : > { %v373_v39 = vpop.f32.mrb[0].mxu1 }
 0x229   : > { %v380_v43 = vsub.f32 %v373_v39, %v1187_v1  ;;  %v682_v44 = vpop.f32.mrb[1].mxu1 }
 0x22a   : > { %v376_v47 = vpop.f32.mrb[2].mxu1 }
 0x22b   : > { %v382_v50 = vand.u32 2147483647, %v380_v43  ;;  %v381_v51 = vsub.f32 %v376_v47, %v1189_v2  ;;  %v683_v52 = vpop.f32.mrb[3].mxu1 }
 0x22d   : > { %v384_v56 = vmul.f32 5.0, %v382_v50  ;;  %v383_v57 = vand.u32 2147483647, %v381_v51 }
 0x22f   : > { %v386_v60 = vadd.f32 1.0, %v384_v56  ;;  %v385_v61 = vmul.f32 5.0, %v383_v57 }
 0x231   : > { %v387_v0 = vadd.f32 1.0, %v385_v61  ;;  %v462_v3 = vmul.f32 %v430_v59, %v386_v60  ;;  %v447_v4 = vmul.f32 %v420_v58, %v386_v60  ;;  %v432_v5 = vmul.f32 %v386_v60, %v1187_v1 }
 0x232   : > { %v434_v6 = vsel %vm282_vm1, %v386_v60, 0.0 }
 0x233   : > { %v435_v7 = vsel %vm282_vm1, %v387_v0, 0.0  ;;  %v463_v8 = vmul.f32 %v431_v63, %v387_v0  ;;  %v448_v9 = vmul.f32 %v421_v62, %v387_v0  ;;  %v464_v11 = vsel %vm282_vm1, %v462_v3, 0.0 }
 0x234   : > { %v436_v10 = vadd.f32 %v435_v7, %v434_v6  ;;  %v449_v12 = vsel %vm282_vm1, %v447_v4, 0.0  ;;  %v433_v13 = vmul.f32 %v387_v0, %v1189_v2  ;;  %v477_v16 = vsel %vm282_vm1, %v432_v5, 0.0 }
 0x235   : > { %v465_v14 = vsel %vm282_vm1, %v463_v8, 0.0  ;;  %v450_v15 = vsel %vm282_vm1, %v448_v9, 0.0  ;;  %v490_v1 = vmul.f32 %v432_v5, %v430_v59 }
 0x236   : > { %437 = vadd.xlane.f32.xlu0 %v436_v10  ;;  %v466_v17 = vadd.f32 %v465_v14, %v464_v11  ;;  %v451_v18 = vadd.f32 %v450_v15, %v449_v12  ;;  %v478_v19 = vsel %vm282_vm1, %v433_v13, 0.0  ;;  %v491_v20 = vmul.f32 %v433_v13, %v431_v63 }
 0x237   : > { %v479_v21 = vadd.f32 %v478_v19, %v477_v16  ;;  %v492_v22 = vsel %vm282_vm1, %v490_v1, 0.0  ;;  %v526_v12 = vlaneseq }
 0x238   : > { %467 = vadd.xlane.f32.xlu1 %v466_v17  ;;  %v493_v23 = vsel %vm282_vm1, %v491_v20, 0.0 }
 0x239   : > { %v494_v2 = vadd.f32 %v493_v23, %v492_v22  ;;  %v527_v15 = vand.u32 127, %v526_v12 }
 0x23a   : > { %452 = vadd.xlane.f32.xlu0 %v451_v18 }
 0x23b   : > { %vm529_vm6 = vcmp.eq.s32.totalorder %v527_v15, 1  ;;  %vm528_vm7 = vcmp.eq.s32.totalorder %v527_v15, 0 }
 0x23c   : > { %480 = vadd.xlane.f32.xlu1 %v479_v21 }
 0x23e   : > { %495 = vadd.xlane.f32.xlu0 %v494_v2 }
 0x2c3   : > { %v438_v24 = vpop.xlane.xlu0 %437 }
 0x2c4   : > { %v439_v25 = vrot.slane %v438_v24, 4 }
 0x2c5   : > { %v468_v26 = vpop.xlane.xlu1 %467 }
 0x2c6   : > { %v440_v27 = vadd.f32 %v439_v25, %v438_v24  ;;  %v469_v28 = vrot.slane %v468_v26, 4 }
 0x2c7   : > { %v453_v29 = vpop.xlane.xlu0 %452 }
 0x2c8   : > { %v441_v30 = vrot.slane %v440_v27, 2  ;;  %v470_v31 = vadd.f32 %v469_v28, %v468_v26  ;;  %v454_v32 = vrot.slane %v453_v29, 4 }
 0x2c9   : > { %v481_v33 = vpop.xlane.xlu1 %480 }
 0x2ca   : > { %v471_v34 = vrot.slane %v470_v31, 2  ;;  %v455_v35 = vadd.f32 %v454_v32, %v453_v29  ;;  %v482_v36 = vrot.slane %v481_v33, 4  ;;  %v442_v37 = vadd.f32 %v441_v30, %v440_v27 }
 0x2cb   : > { %v496_v38 = vpop.xlane.xlu0 %495 }
 0x2cc   : > { %v456_v39 = vrot.slane %v455_v35, 2  ;;  %v483_v40 = vadd.f32 %v482_v36, %v481_v33  ;;  %v497_v41 = vrot.slane %v496_v38, 4  ;;  %v443_v42 = vrot.slane %v442_v37, 1 }
 0x2cd   : > { %v472_v43 = vadd.f32 %v471_v34, %v470_v31 }
 0x2ce   : > { %v484_v44 = vrot.slane %v483_v40, 2  ;;  %v498_v45 = vadd.f32 %v497_v41, %v496_v38  ;;  %v444_v46 = vadd.f32 %v443_v42, %v442_v37  ;;  %v457_v47 = vadd.f32 %v456_v39, %v455_v35 }
 0x2cf   : > { %v473_v48 = vrot.slane %v472_v43, 1 }
 0x2d0   : > { %v485_v49 = vadd.f32 %v484_v44, %v483_v40  ;;  %v499_v50 = vrot.slane %v498_v45, 2  ;;  %684 = vpush %v444_v46  ;;  %v458_v51 = vrot.slane %v457_v47, 1 }
 0x2d1   : > { %v474_v55 = vadd.f32 %v473_v48, %v472_v43 }
 0x2d2   : > { %v500_v52 = vadd.f32 %v499_v50, %v498_v45  ;;  %v459_v53 = vadd.f32 %v458_v51, %v457_v47  ;;  %v486_v54 = vrot.slane %v485_v49, 1 }
 0x2d4   : > { %686 = vpush %v459_v53  ;;  %v487_v56 = vadd.f32 %v486_v54, %v485_v49  ;;  %v501_v57 = vrot.slane %v500_v52, 1 }
 0x2d5   : > { %688 = vpush %v474_v55 }
 0x2d6   : > { %690 = vpush %v487_v56  ;;  %v502_v58 = vadd.f32 %v501_v57, %v500_v52 }
 0x2d8   : > { %692 = vpush %v502_v58 }
 0x301   : > { %s685_s26 = spop %684 }
 0x302   : > { %v446_v59 = vstv %s685_s26 }
 0x303   : > { %v517_v60 = vmul.f32 2.0, %v446_v59 }
 0x305   : > { %s1228_s8 = spop %686 }
 0x306   : > { %s689_s12 = spop %688  ;;  %v461_v20 = vstv %s1228_s8 }
 0x307   : > { %v476_v61 = vstv %s689_s12  ;;  %s691_s10 = spop %690 }
 0x308   : > { %v514_v62 = vsub.f32 %v446_v59, %v476_v61  ;;  %v518_v63 = vsub.f32 %v517_v60, %v476_v61  ;;  %v489_v0 = vstv %s691_s10 }
 0x309   : > { %v507_v3 = vadd.f32 %v489_v0, %v476_v61  ;;  %s693_s14 = spop %692 }
 0x30a   : > { %v515_v4 = vsub.f32 %v514_v62, %v489_v0  ;;  %v504_v5 = vstv %s693_s14  ;;  %v519_v7 = vsub.f32 %v518_v63, %v489_v0 }
 0x30b   : > { %v509_v6 = vsub.f32 %v507_v3, %v504_v5  ;;  %v508_v14 = vadd.f32 1.0, %v504_v5 }
 0x30c   : > { %v516_v8 = vadd.f32 %v515_v4, %v504_v5 }
 0x30d   : > { %v510_v9 = vadd.f32 1.0, %v509_v6 }
 0x30e   : > { %v521_v10 = vsub.f32 %v519_v7, %v516_v8  ;;  %v520_v1 = vadd.f32 1.0, %v516_v8 }
 0x30f   : > { %776 = vrcp.f32 %v510_v9 }
 0x310   : > { %v522_v11 = vadd.f32 1.0, %v521_v10 }
 0x312   : > { %778 = vrcp.f32 %v522_v11 }
 0x313   : > { %780 = vrcp.f32 %v446_v59 }
 0x319   : > { %v777_v13 = vpop.eup %776 }
 0x31a   : > { %v512_v16 = vmul.f32 %v777_v13, %v508_v14 }
 0x31c   : > { %v779_v17 = vpop.eup %778  ;;  %v513_v21 = vsub.f32 1.0, %v512_v16 }
 0x31d   : > { %v781_v18 = vpop.eup %780  ;;  %v524_v19 = vmul.f32 %v779_v17, %v520_v1 }
 0x31e   : > { %v506_v23 = vmul.f32 %v781_v18, %v461_v20 }
 0x31f   : > { %v525_v22 = vsub.f32 1.0, %v524_v19 }
 0x321   : > { %v530_v2 = vsel %vm529_vm6, %v513_v21, %v525_v22 }
 0x322   : > { %v531_v24 = vsel %vm528_vm7, %v506_v23, %v530_v2 }
 0x323   : > { %533 = vst.msk [vmem:[%s268_s20] sm:$0x1] %vm532_vm8, %v531_v24 }
 0x324   : > { %883 = shalt.err (!%p880_p6)
}
 0x325   : > { %s884_s0 = scalar_lea.hbm %s1236_s6, 16  ;;  %s888_s26 = scalar_lea.hbm %s1284_s4, 32 }
 0x326   : > { %p885_p8 = scmp.ne.s32.totalorder %s1236_s6, %s884_s0  ;;  %p889_p4 = scmp.lt.u32.totalorder %s1236_s6, %s1284_s4 }
 0x327   : > { %p890_p11 = scmp.lt.u32.totalorder %s888_s26, %s884_s0  ;;  %p892_p3 = scmp.lt.u32.totalorder %s884_s0, %s1236_s6 }
 0x328   : > { %p886_p10 = pnand %p885_p8, %p1072_p12 }
 0x329   : > { %p891_p13 = por %p890_p11, %p889_p4 }
 0x32a   : > { %p887_p0 = pneg %p886_p10 }
 0x32b   : > { %p893_p7 = por %p892_p3, %p891_p13 }
 0x32d   : > { %p894_p9 = pnand %p893_p7, %p887_p0 }
 0x32f   : > { %897 = shalt.err (!%p894_p9)
}
 0x330   : > { %702 = dma.vmem_to_hbm [thread:$0]  (%p1072_p12), %s1238_s5, 16, %s1236_s6, %s535_s19  }
 0x331 PF: > { %s559_s10 = sand.u32 1, %s932_s15   ;;  %p1305_p1 = scmp.ne.s32.totalorder %s1290_s22, 0 }
 0x332   : > { %p1306_p5 = scmp.ge.s32.totalorder %s944_s18, 2  ;;  %s560_s14 = scalar_lea.sflag [#allocation4], %s559_s10 }
 0x334   : > { %p716_p2 = pnand %p1306_p5, %p1305_p1 }
 0x336   : > { %927 = dma.done.wait (!%p716_p2), %s560_s14, 16  }
 0x337   : > { %929 = vsyncadd (!%p716_p2), %s560_s14, 4294967280  ;;  %p20_p6 = scmp.ge.s32.totalorder %s1037_s27, 4   ;;  %s1307_s15 = smov %s936_s16 }
 0x338   : > { %s1308_s16 = smov %s940_s17  ;;  %s1309_s17 = smov %s1068_s24 }
 0x339   : > { %s1310_s18 = smov %s1037_s27  ;;  %22 = sbr.rel (!%p20_p6) target bundleno = 9 (0x9), region = 98 }
 0x340   :  { %564 = vsyncpa [#allocation3], 1 }
 0x341   :  { %566 = vsyncpa [#allocation3 + $0x1], 1 }
 0x342   :  { %567 = vsyncpa [#allocation6], 1 }
 0x343   :  { %569 = vsyncpa [#allocation6 + $0x1], 1 }
 0x344   :  { %570 = vsyncpa [#allocation4], 1 }
 0x345   :  { %572 = vsyncpa [#allocation4 + $0x1], 1 }

</bundles_post_ra>
